<compile_context>
chip_gen: v7x
topology: tpu7x:2x2x1
jax: 0.10.0
libtpu: 0.0.40
codegen_flags: <defaults>
</compile_context>

<pallas_src>
import functools
import math

import jax
import jax.numpy as jnp
from jax.experimental import pallas as pl
from jax.experimental.pallas import tpu as pltpu


def _custom_loss_kernel(pred_ref, true_ref, out_ref, *, delta, gamma, eps):
    """One grid step: per-voxel softmax/focal math + lane-wise partial sums.

    pred_ref : (N, 2, R, 128) logits block (both classes)
    true_ref : (N, 1, R, 128) one-hot target block (foreground channel only)
    out_ref  : (1, 6*N, 8, 128) resident partial-sum accumulator.
               Rows [k*N:(k+1)*N] hold slot k:
                 0 tp0, 1 tp1, 2 vol_pred0, 3 vol_pred1, 4 vol_true1, 5 focal
    """
    s = pl.program_id(1)

    @pl.when(s == 0)
    def _init():
        out_ref[...] = jnp.zeros_like(out_ref)

    x0 = pred_ref[:, 0].astype(jnp.float32)        # (N, R, 128)
    x1 = pred_ref[:, 1].astype(jnp.float32)
    t1 = true_ref[:, 0].astype(jnp.float32)
    t0 = 1.0 - t1                                  # exact for one-hot targets

    n, r = x0.shape[0], x0.shape[1]

    # 2-class softmax: probabilities via one EUP reciprocal, log-probs via a
    # single shared log-sum-exp, clipped (== log(clip(p, eps, 1-eps))).
    m = jnp.maximum(x0, x1)
    d0 = x0 - m
    d1 = x1 - m
    e0 = jnp.exp(d0)
    e1 = jnp.exp(d1)
    ssum = e0 + e1
    inv = pl.reciprocal(ssum, approx=True)
    p0 = e0 * inv
    p1 = e1 * inv

    lsum = jnp.log(ssum)
    log_lo = jnp.float32(math.log(eps))
    log_hi = jnp.float32(math.log1p(-eps))
    lp0 = jnp.clip(d0 - lsum, log_lo, log_hi)
    lp1 = jnp.clip(d1 - lsum, log_lo, log_hi)

    # (1 - p_back)^gamma == p_fore^gamma == exp(gamma * log p_fore)
    pow1 = jnp.exp(gamma * lp1)

    # back_ce + fore_ce per voxel (asymmetric focal cross-entropy)
    focal_v = -((1.0 - delta) * pow1 * (t0 * lp0) + delta * (t1 * lp1))

    def fold(q):
        # (N, R, 128) -> (N, 8, 128): vreg-aligned VALU adds only (no XLU).
        acc = q[:, 0:8]
        for i in range(1, r // 8):
            acc = acc + q[:, i * 8:(i + 1) * 8]
        return acc

    out_ref[0, 0 * n:1 * n] += fold(t0 * p0)       # tp, class 0
    out_ref[0, 1 * n:2 * n] += fold(t1 * p1)       # tp, class 1
    out_ref[0, 2 * n:3 * n] += fold(p0)            # vol_pred, class 0
    out_ref[0, 3 * n:4 * n] += fold(p1)            # vol_pred, class 1
    out_ref[0, 4 * n:5 * n] += fold(t1)            # vol_true, class 1
    out_ref[0, 5 * n:6 * n] += fold(focal_v)       # focal CE sum


def custom_loss_pallas(y_pred, y_true, *, weightAUF=2.0, weightBVTV=0.5,
                       weight=0.5, delta=0.6, gamma=0.8, epsilon=1e-7,
                       max_rows_per_tile=256, n_split=2):
    """y_pred: (N, 2, D, H, W) logits; y_true: (N, 2, D, H, W) one-hot."""
    N, C, D, H, W = y_pred.shape
    assert C == 2, "CustomLoss (asymmetric unified focal) assumes 2 classes"
    S = D * H * W
    assert S % 128 == 0, "flattened spatial size must be a multiple of 128"
    NR = S // 128
    assert NR % 8 == 0, "flattened spatial size must be a multiple of 1024"
    # TODO(synk): pad the flattened spatial axis for volumes not divisible by 1024.

    # Split the spatial range across the (up to) 2 TensorCores on v7x; on
    # single-core chips this is just an outer sequential loop of length 2.
    n_par = n_split if n_split > 1 and (NR // 8) % n_split == 0 else 1
    rows_per_par = NR // n_par
    # Largest multiple-of-8 row count per tile that divides rows_per_par and
    # stays <= max_rows_per_tile (keeps blocks big but well inside VMEM).
    R = 8
    for rr in range(1, min(rows_per_par // 8, max(max_rows_per_tile // 8, 1)) + 1):
        if (rows_per_par // 8) % rr == 0:
            R = 8 * rr
    tiles_per_par = rows_per_par // R

    # Free reshapes only (row-major contiguous): no transpose, no dtype cast.
    pred = y_pred.reshape(N, C, NR, 128)
    true = y_true.reshape(N, C, NR, 128)

    n_slots = 6
    kernel = functools.partial(_custom_loss_kernel,
                               delta=delta, gamma=gamma, eps=epsilon)

    pred_block = N * C * R * 128 * y_pred.dtype.itemsize
    true_block = N * 1 * R * 128 * y_true.dtype.itemsize
    out_block = n_slots * N * 8 * 128 * 4
    vmem_limit = int(2 * (pred_block + true_block) + 2 * out_block + (4 << 20))

    partials = pl.pallas_call(
        kernel,
        out_shape=jax.ShapeDtypeStruct((n_par, n_slots * N, 8, 128),
                                       jnp.float32),
        grid_spec=pltpu.PrefetchScalarGridSpec(
            num_scalar_prefetch=0,
            grid=(n_par, tiles_per_par),
            in_specs=[
                # Both logit channels.
                pl.BlockSpec((N, C, R, 128),
                             lambda p, s: (0, 0, p * tiles_per_par + s, 0)),
                # Foreground target channel only (half the HBM read).
                pl.BlockSpec((N, 1, R, 128),
                             lambda p, s: (0, 1, p * tiles_per_par + s, 0)),
            ],
            out_specs=pl.BlockSpec((1, n_slots * N, 8, 128),
                                   lambda p, s: (p, 0, 0, 0)),
        ),
        compiler_params=pltpu.CompilerParams(
            dimension_semantics=("parallel", "arbitrary"),
            vmem_limit_bytes=vmem_limit),
    )(pred, true)

    # ---- tiny O(N) scalar epilogue (dice / Tversky / BV-TV combine) ----
    sums = jnp.sum(partials, axis=(0, 2, 3)).reshape(n_slots, N)
    tp0, tp1 = sums[0], sums[1]
    vp0, vp1 = sums[2], sums[3]
    vt1 = sums[4]
    focal_sum = sums[5]

    s_total = jnp.float32(S)
    vt0 = s_total - vt1                 # exact for one-hot targets
    fn0 = vt0 - tp0                     # sum t0*(1-p0)
    fn1 = vt1 - tp1
    fp0 = vp0 - tp0                     # sum (1-t0)*p0
    fp1 = vp1 - tp1

    eps = epsilon
    dice0 = (tp0 + eps) / (tp0 + delta * fn0 + (1.0 - delta) * fp0 + eps)
    dice1 = (tp1 + eps) / (tp1 + delta * fn1 + (1.0 - delta) * fp1 + eps)
    back_dice = 1.0 - dice0
    fore_dice = (1.0 - dice1) * jnp.power(1.0 - dice1, -gamma)
    tversky = (jnp.sum(back_dice) + jnp.sum(fore_dice)) / (2.0 * N)

    focal = jnp.sum(focal_sum) / (N * S)
    auf = weight * focal + (1.0 - weight) * tversky

    bvtv_pred = vp1 / (vp0 + vp1)
    bvtv_true = vt1 / (vt0 + vt1)
    bvtv_mse = jnp.mean((bvtv_pred - bvtv_true) ** 2)

    return weightAUF * auf + weightBVTV * bvtv_mse


def custom_loss_ref(y_pred, y_true, *, weightAUF=2.0, weightBVTV=0.5,
                    weight=0.5, delta=0.6, gamma=0.8, epsilon=1e-7):
    """Pure-JAX reference mirroring the PyTorch module semantics."""
    p = jax.nn.softmax(y_pred.astype(jnp.float32), axis=1)
    t = y_true.astype(jnp.float32)
    pc = jnp.clip(p, epsilon, 1.0 - epsilon)

    # AsymmetricFocalLoss
    ce = -t * jnp.log(pc)
    back_ce = (1.0 - delta) * jnp.power(1.0 - pc[:, 0], gamma) * ce[:, 0]
    fore_ce = delta * ce[:, 1]
    focal = jnp.mean(back_ce + fore_ce)

    # AsymmetricFocalTverskyLoss
    axes = (2, 3, 4)
    tp = jnp.sum(t * pc, axis=axes)
    fn = jnp.sum(t * (1.0 - pc), axis=axes)
    fp = jnp.sum((1.0 - t) * pc, axis=axes)
    dice = (tp + epsilon) / (tp + delta * fn + (1.0 - delta) * fp + epsilon)
    back_dice = 1.0 - dice[:, 0]
    fore_dice = (1.0 - dice[:, 1]) * jnp.power(1.0 - dice[:, 1], -gamma)
    tversky = jnp.mean(jnp.stack([back_dice, fore_dice], axis=-1))

    auf = weight * focal + (1.0 - weight) * tversky

    vols_pred = jnp.sum(p, axis=axes)
    vols_true = jnp.sum(t, axis=axes)
    bvtv_pred = vols_pred[:, 1] / (vols_pred[:, 0] + vols_pred[:, 1])
    bvtv_true = vols_true[:, 1] / (vols_true[:, 0] + vols_true[:, 1])
    bvtv_mse = jnp.mean((bvtv_pred - bvtv_true) ** 2)

    return weightAUF * auf + weightBVTV * bvtv_mse


if __name__ == "__main__":
    key = jax.random.PRNGKey(0)
    k1, k2 = jax.random.split(key)

    N, C, D, H, W = 2, 2, 16, 16, 16
    logits = jax.random.normal(k1, (N, C, D, H, W), dtype=jnp.float32)
    labels = jax.random.bernoulli(k2, 0.4, (N, D, H, W)).astype(jnp.int32)
    y_true = jnp.transpose(jax.nn.one_hot(labels, C, dtype=jnp.float32),
                           (0, 4, 1, 2, 3))          # (N, C, D, H, W) one-hot

    ref = jax.block_until_ready(custom_loss_ref(logits, y_true))

    # Small tiles: exercises multi-step accumulation and both grid halves.
    loss_small = jax.block_until_ready(
        custom_loss_pallas(logits, y_true, max_rows_per_tile=8))
    # Default (large-tile) configuration.
    loss = jax.block_until_ready(custom_loss_pallas(logits, y_true))

    for v in (loss_small, loss):
        assert bool(jnp.isfinite(v)), f"non-finite loss: {v}"
        assert bool(jnp.allclose(v, ref, rtol=2e-3, atol=1e-4)), (v, ref)
    print("KERNEL_OK")
</pallas_src>

<mosaic_0001>
module attributes {stable_mosaic.version = 11 : i64} {
  func.func @_custom_loss_kernel(%arg0: i32, %arg1: i32, %arg2: memref<2x2x8x128xf32, #tpu.memory_space<vmem>>, %arg3: memref<2x1x8x128xf32, #tpu.memory_space<vmem>>, %arg4: memref<1x12x8x128xf32, #tpu.memory_space<vmem>>) attributes {dimension_semantics = [#tpu.dimension_semantics<parallel>, #tpu.dimension_semantics<arbitrary>], iteration_bounds = array<i64: 2, 2>, scalar_prefetch = 0 : i64, scratch_operands = 0 : i64, tpu.core_type = #tpu.core_type<tc>, window_params = [{transform_indices = @transform_0, window_bounds = array<i64: 2, 2, 8, 128>}, {transform_indices = @transform_1, window_bounds = array<i64: 2, 1, 8, 128>}, {transform_indices = @transform_2, window_bounds = array<i64: 1, 12, 8, 128>}]} {
    %c0_i32 = arith.constant 0 : i32
    %0 = arith.cmpi eq, %arg1, %c0_i32 : i32
    %1 = arith.extui %0 : i1 to i32
    %c0_i32_0 = arith.constant 0 : i32
    %2 = arith.cmpi ne, %1, %c0_i32_0 : i32
    scf.if %2 {
      %cst_62 = arith.constant 0.000000e+00 : f32
      %82 = vector.broadcast %cst_62 : f32 to vector<1x12x8x128xf32>
      %c0_63 = arith.constant 0 : index
      %c0_64 = arith.constant 0 : index
      %c0_65 = arith.constant 0 : index
      %c0_66 = arith.constant 0 : index
      %83 = vector.load %arg4[%c0_63, %c0_64, %c0_65, %c0_66] : memref<1x12x8x128xf32, #tpu.memory_space<vmem>>, vector<1x12x8x128xf32>
      tpu.vector_store %arg4[%c0_63, %c0_64, %c0_65, %c0_66], %82 {strides = array<i32>} : memref<1x12x8x128xf32, #tpu.memory_space<vmem>>, vector<1x12x8x128xf32>,
    } else {
    }
    %c0 = arith.constant 0 : index
    %c0_1 = arith.constant 0 : index
    %c0_2 = arith.constant 0 : index
    %c0_3 = arith.constant 0 : index
    %3 = vector.load %arg2[%c0, %c0_1, %c0_2, %c0_3] : memref<2x2x8x128xf32, #tpu.memory_space<vmem>>, vector<2x1x8x128xf32>
    %4 = vector.shape_cast %3 : vector<2x1x8x128xf32> to vector<2x8x128xf32>
    %c0_4 = arith.constant 0 : index
    %c1 = arith.constant 1 : index
    %c0_5 = arith.constant 0 : index
    %c0_6 = arith.constant 0 : index
    %5 = vector.load %arg2[%c0_4, %c1, %c0_5, %c0_6] : memref<2x2x8x128xf32, #tpu.memory_space<vmem>>, vector<2x1x8x128xf32>
    %6 = vector.shape_cast %5 : vector<2x1x8x128xf32> to vector<2x8x128xf32>
    %c0_7 = arith.constant 0 : index
    %c0_8 = arith.constant 0 : index
    %c0_9 = arith.constant 0 : index
    %c0_10 = arith.constant 0 : index
    %7 = vector.load %arg3[%c0_7, %c0_8, %c0_9, %c0_10] : memref<2x1x8x128xf32, #tpu.memory_space<vmem>>, vector<2x1x8x128xf32>
    %8 = vector.shape_cast %7 : vector<2x1x8x128xf32> to vector<2x8x128xf32>
    %cst = arith.constant 1.000000e+00 : f32
    %9 = vector.broadcast %cst : f32 to vector<2x8x128xf32>
    %10 = arith.subf %9, %8 : vector<2x8x128xf32>
    %11 = arith.maximumf %4, %6 : vector<2x8x128xf32>
    %12 = arith.subf %4, %11 : vector<2x8x128xf32>
    %13 = arith.subf %6, %11 : vector<2x8x128xf32>
    %14 = math.exp %12 : vector<2x8x128xf32>
    %15 = math.exp %13 : vector<2x8x128xf32>
    %16 = arith.addf %14, %15 : vector<2x8x128xf32>
    %17 = tpu.reciprocal %16 {approx = true} : vector<2x8x128xf32> -> vector<2x8x128xf32>
    %18 = arith.mulf %14, %17 : vector<2x8x128xf32>
    %19 = arith.mulf %15, %17 : vector<2x8x128xf32>
    %20 = math.log %16 : vector<2x8x128xf32>
    %21 = arith.subf %12, %20 : vector<2x8x128xf32>
    %cst_11 = arith.constant -16.1180954 : f32
    %cst_12 = arith.constant -1.00000008E-7 : f32
    %22 = vector.broadcast %cst_11 : f32 to vector<2x8x128xf32>
    %23 = arith.maximumf %22, %21 : vector<2x8x128xf32>
    %24 = vector.broadcast %cst_12 : f32 to vector<2x8x128xf32>
    %25 = arith.minimumf %24, %23 : vector<2x8x128xf32>
    %26 = arith.subf %13, %20 : vector<2x8x128xf32>
    %cst_13 = arith.constant -16.1180954 : f32
    %cst_14 = arith.constant -1.00000008E-7 : f32
    %27 = vector.broadcast %cst_13 : f32 to vector<2x8x128xf32>
    %28 = arith.maximumf %27, %26 : vector<2x8x128xf32>
    %29 = vector.broadcast %cst_14 : f32 to vector<2x8x128xf32>
    %30 = arith.minimumf %29, %28 : vector<2x8x128xf32>
    %cst_15 = arith.constant 8.000000e-01 : f32
    %31 = vector.broadcast %cst_15 : f32 to vector<2x8x128xf32>
    %32 = arith.mulf %31, %30 : vector<2x8x128xf32>
    %33 = math.exp %32 : vector<2x8x128xf32>
    %cst_16 = arith.constant 4.000000e-01 : f32
    %34 = vector.broadcast %cst_16 : f32 to vector<2x8x128xf32>
    %35 = arith.mulf %34, %33 : vector<2x8x128xf32>
    %36 = arith.mulf %10, %25 : vector<2x8x128xf32>
    %37 = arith.mulf %35, %36 : vector<2x8x128xf32>
    %38 = arith.mulf %8, %30 : vector<2x8x128xf32>
    %cst_17 = arith.constant 6.000000e-01 : f32
    %39 = vector.broadcast %cst_17 : f32 to vector<2x8x128xf32>
    %40 = arith.mulf %39, %38 : vector<2x8x128xf32>
    %41 = arith.addf %37, %40 : vector<2x8x128xf32>
    %cst_18 = arith.constant 0.000000e+00 : f32
    %42 = vector.broadcast %cst_18 : f32 to vector<2x8x128xf32>
    %43 = arith.subf %42, %41 : vector<2x8x128xf32>
    %c0_19 = arith.constant 0 : index
    %c0_20 = arith.constant 0 : index
    %c0_21 = arith.constant 0 : index
    %c0_22 = arith.constant 0 : index
    %44 = vector.load %arg4[%c0_19, %c0_20, %c0_21, %c0_22] : memref<1x12x8x128xf32, #tpu.memory_space<vmem>>, vector<1x2x8x128xf32>
    %45 = vector.shape_cast %44 : vector<1x2x8x128xf32> to vector<2x8x128xf32>
    %46 = arith.mulf %10, %18 : vector<2x8x128xf32>
    %47 = arith.addf %45, %46 : vector<2x8x128xf32>
    %c0_23 = arith.constant 0 : index
    %c0_24 = arith.constant 0 : index
    %c0_25 = arith.constant 0 : index
    %c0_26 = arith.constant 0 : index
    %48 = vector.load %arg4[%c0_23, %c0_24, %c0_25, %c0_26] : memref<1x12x8x128xf32, #tpu.memory_space<vmem>>, vector<1x2x8x128xf32>
    %49 = vector.shape_cast %48 : vector<1x2x8x128xf32> to vector<2x8x128xf32>
    %50 = vector.shape_cast %47 : vector<2x8x128xf32> to vector<1x2x8x128xf32>
    tpu.vector_store %arg4[%c0_23, %c0_24, %c0_25, %c0_26], %50 {strides = array<i32>} : memref<1x12x8x128xf32, #tpu.memory_space<vmem>>, vector<1x2x8x128xf32>,
    %c0_27 = arith.constant 0 : index
    %c2 = arith.constant 2 : index
    %c0_28 = arith.constant 0 : index
    %c0_29 = arith.constant 0 : index
    %51 = vector.load %arg4[%c0_27, %c2, %c0_28, %c0_29] : memref<1x12x8x128xf32, #tpu.memory_space<vmem>>, vector<1x2x8x128xf32>
    %52 = vector.shape_cast %51 : vector<1x2x8x128xf32> to vector<2x8x128xf32>
    %53 = arith.mulf %8, %19 : vector<2x8x128xf32>
    %54 = arith.addf %52, %53 : vector<2x8x128xf32>
    %c0_30 = arith.constant 0 : index
    %c2_31 = arith.constant 2 : index
    %c0_32 = arith.constant 0 : index
    %c0_33 = arith.constant 0 : index
    %55 = vector.load %arg4[%c0_30, %c2_31, %c0_32, %c0_33] : memref<1x12x8x128xf32, #tpu.memory_space<vmem>>, vector<1x2x8x128xf32>
    %56 = vector.shape_cast %55 : vector<1x2x8x128xf32> to vector<2x8x128xf32>
    %57 = vector.shape_cast %54 : vector<2x8x128xf32> to vector<1x2x8x128xf32>
    tpu.vector_store %arg4[%c0_30, %c2_31, %c0_32, %c0_33], %57 {strides = array<i32>} : memref<1x12x8x128xf32, #tpu.memory_space<vmem>>, vector<1x2x8x128xf32>,
    %c0_34 = arith.constant 0 : index
    %c4 = arith.constant 4 : index
    %c0_35 = arith.constant 0 : index
    %c0_36 = arith.constant 0 : index
    %58 = vector.load %arg4[%c0_34, %c4, %c0_35, %c0_36] : memref<1x12x8x128xf32, #tpu.memory_space<vmem>>, vector<1x2x8x128xf32>
    %59 = vector.shape_cast %58 : vector<1x2x8x128xf32> to vector<2x8x128xf32>
    %60 = arith.addf %59, %18 : vector<2x8x128xf32>
    %c0_37 = arith.constant 0 : index
    %c4_38 = arith.constant 4 : index
    %c0_39 = arith.constant 0 : index
    %c0_40 = arith.constant 0 : index
    %61 = vector.load %arg4[%c0_37, %c4_38, %c0_39, %c0_40] : memref<1x12x8x128xf32, #tpu.memory_space<vmem>>, vector<1x2x8x128xf32>
    %62 = vector.shape_cast %61 : vector<1x2x8x128xf32> to vector<2x8x128xf32>
    %63 = vector.shape_cast %60 : vector<2x8x128xf32> to vector<1x2x8x128xf32>
    tpu.vector_store %arg4[%c0_37, %c4_38, %c0_39, %c0_40], %63 {strides = array<i32>} : memref<1x12x8x128xf32, #tpu.memory_space<vmem>>, vector<1x2x8x128xf32>,
    %c0_41 = arith.constant 0 : index
    %c6 = arith.constant 6 : index
    %c0_42 = arith.constant 0 : index
    %c0_43 = arith.constant 0 : index
    %64 = vector.load %arg4[%c0_41, %c6, %c0_42, %c0_43] : memref<1x12x8x128xf32, #tpu.memory_space<vmem>>, vector<1x2x8x128xf32>
    %65 = vector.shape_cast %64 : vector<1x2x8x128xf32> to vector<2x8x128xf32>
    %66 = arith.addf %65, %19 : vector<2x8x128xf32>
    %c0_44 = arith.constant 0 : index
    %c6_45 = arith.constant 6 : index
    %c0_46 = arith.constant 0 : index
    %c0_47 = arith.constant 0 : index
    %67 = vector.load %arg4[%c0_44, %c6_45, %c0_46, %c0_47] : memref<1x12x8x128xf32, #tpu.memory_space<vmem>>, vector<1x2x8x128xf32>
    %68 = vector.shape_cast %67 : vector<1x2x8x128xf32> to vector<2x8x128xf32>
    %69 = vector.shape_cast %66 : vector<2x8x128xf32> to vector<1x2x8x128xf32>
    tpu.vector_store %arg4[%c0_44, %c6_45, %c0_46, %c0_47], %69 {strides = array<i32>} : memref<1x12x8x128xf32, #tpu.memory_space<vmem>>, vector<1x2x8x128xf32>,
    %c0_48 = arith.constant 0 : index
    %c8 = arith.constant 8 : index
    %c0_49 = arith.constant 0 : index
    %c0_50 = arith.constant 0 : index
    %70 = vector.load %arg4[%c0_48, %c8, %c0_49, %c0_50] : memref<1x12x8x128xf32, #tpu.memory_space<vmem>>, vector<1x2x8x128xf32>
    %71 = vector.shape_cast %70 : vector<1x2x8x128xf32> to vector<2x8x128xf32>
    %72 = arith.addf %71, %8 : vector<2x8x128xf32>
    %c0_51 = arith.constant 0 : index
    %c8_52 = arith.constant 8 : index
    %c0_53 = arith.constant 0 : index
    %c0_54 = arith.constant 0 : index
    %73 = vector.load %arg4[%c0_51, %c8_52, %c0_53, %c0_54] : memref<1x12x8x128xf32, #tpu.memory_space<vmem>>, vector<1x2x8x128xf32>
    %74 = vector.shape_cast %73 : vector<1x2x8x128xf32> to vector<2x8x128xf32>
    %75 = vector.shape_cast %72 : vector<2x8x128xf32> to vector<1x2x8x128xf32>
    tpu.vector_store %arg4[%c0_51, %c8_52, %c0_53, %c0_54], %75 {strides = array<i32>} : memref<1x12x8x128xf32, #tpu.memory_space<vmem>>, vector<1x2x8x128xf32>,
    %c0_55 = arith.constant 0 : index
    %c10 = arith.constant 10 : index
    %c0_56 = arith.constant 0 : index
    %c0_57 = arith.constant 0 : index
    %76 = vector.load %arg4[%c0_55, %c10, %c0_56, %c0_57] : memref<1x12x8x128xf32, #tpu.memory_space<vmem>>, vector<1x2x8x128xf32>
    %77 = vector.shape_cast %76 : vector<1x2x8x128xf32> to vector<2x8x128xf32>
    %78 = arith.addf %77, %43 : vector<2x8x128xf32>
    %c0_58 = arith.constant 0 : index
    %c10_59 = arith.constant 10 : index
    %c0_60 = arith.constant 0 : index
    %c0_61 = arith.constant 0 : index
    %79 = vector.load %arg4[%c0_58, %c10_59, %c0_60, %c0_61] : memref<1x12x8x128xf32, #tpu.memory_space<vmem>>, vector<1x2x8x128xf32>
    %80 = vector.shape_cast %79 : vector<1x2x8x128xf32> to vector<2x8x128xf32>
    %81 = vector.shape_cast %78 : vector<2x8x128xf32> to vector<1x2x8x128xf32>
    tpu.vector_store %arg4[%c0_58, %c10_59, %c0_60, %c0_61], %81 {strides = array<i32>} : memref<1x12x8x128xf32, #tpu.memory_space<vmem>>, vector<1x2x8x128xf32>,
    return
  }
  func.func @transform_0(%arg0: i32, %arg1: i32) -> (i32, i32, i32, i32) {
    %c2_i32 = arith.constant 2 : i32
    %0 = arith.muli %arg0, %c2_i32 : i32
    %1 = arith.addi %0, %arg1 : i32
    %c0_i32 = arith.constant 0 : i32
    %c0_i32_0 = arith.constant 0 : i32
    %c0_i32_1 = arith.constant 0 : i32
    %c0_i32_2 = arith.constant 0 : i32
    return %c0_i32, %c0_i32_0, %1, %c0_i32_1 : i32, i32, i32, i32
  }
  func.func @transform_1(%arg0: i32, %arg1: i32) -> (i32, i32, i32, i32) {
    %c2_i32 = arith.constant 2 : i32
    %0 = arith.muli %arg0, %c2_i32 : i32
    %1 = arith.addi %0, %arg1 : i32
    %c0_i32 = arith.constant 0 : i32
    %c1_i32 = arith.constant 1 : i32
    %c0_i32_0 = arith.constant 0 : i32
    %c0_i32_1 = arith.constant 0 : i32
    return %c0_i32, %c1_i32, %1, %c0_i32_0 : i32, i32, i32, i32
  }
  func.func @transform_2(%arg0: i32, %arg1: i32) -> (i32, i32, i32, i32) {
    %c0_i32 = arith.constant 0 : i32
    %c0_i32_0 = arith.constant 0 : i32
    %c0_i32_1 = arith.constant 0 : i32
    %c0_i32_2 = arith.constant 0 : i32
    return %arg0, %c0_i32, %c0_i32_0, %c0_i32_1 : i32, i32, i32, i32
  }
}

</mosaic_0001>

<bundles_post_ra>
// kernel: tpu_custom_call.1
= control target key start
LH: loop header
LB: loop body
LE: loop exit
PB: predicated region body
PF: predicated region fallthrough
CT: control target
= control target key end

     0   :  { %s1240_s0 = inlined_call_operand.hbm [shape: f32[2,2,32,128], index: 0, kind: input, shape index: {}]   ;;  %s1241_s1 = inlined_call_operand.hbm [shape: f32[2,2,32,128], index: 1, kind: input, shape index: {}]   ;;  %s1242_s2 = inlined_call_operand.hbm [shape: f32[2,12,8,128], index: 2, kind: output, shape index: {}]  }
   0x1   :  { %1251 = sst [smem:[#allocation17_spill]] %s1240_s0 }
   0x2   :  { %7 = vsyncpa [#allocation3], 0 }
   0x3   :  { %9 = vsyncpa [#allocation3 + $0x1], 0 }
   0x4   :  { %10 = vsyncpa [#allocation6], 0 }
   0x5   :  { %12 = vsyncpa [#allocation6 + $0x1], 0 }
   0x6   :  { %13 = vsyncpa [#allocation4], 0 }
   0x7   :  { %15 = vsyncpa [#allocation4 + $0x1], 0  ;;  %s876_s9 = smov 0   ;;  %s878_s10 = smov 0  }
   0x8   :  { %s880_s11 = smov 0   ;;  %s882_s12 = smov 0  }
   0x9   :  { %s884_s13 = smov 0   ;;  %s886_s14 = smov 0  }
   0xa   :  { %s888_s15 = smov 0   ;;  %s890_s16 = smov 0  }
   0xb   :  { %s892_s17 = smov 0   ;;  %s894_s18 = smov 0  }
   0xc   :  { %s896_s19 = smov 0  }
   0xd LB: > { %1252 = sst [smem:[#allocation11_spill]] %s829_s14  ;;  %s483_s20 = sadd.s32 4294967295, %s849_s19   ;;  %s849_s19 = sphi %s896_s19, %s21_s19   ;;  %s845_s18 = sphi %s894_s18, %s1276_s18   ;;  %s841_s17 = sphi %s892_s17, %s1275_s17   ;;  %s837_s16 = sphi %s890_s16, %s1274_s16   ;;  %s833_s15 = sphi %s888_s15, %s1273_s15   ;;  %s829_s14 = sphi %s886_s14, %s1272_s14   ;;  %s825_s13 = sphi %s884_s13, %s1281_s13   ;;  %s821_s12 = sphi %s882_s12, %s1280_s12   ;;  %s817_s11 = sphi %s880_s11, %s1279_s11   ;;  %s813_s10 = sphi %s878_s10, %s1278_s10   ;;  %s809_s9 = sphi %s876_s9, %s1277_s9  }
   0xe   : > { %1253 = sst [smem:[#allocation12_spill]] %s841_s17  ;;  %s484_s21 = sadd.s32 4294967294, %s849_s19  }
   0xf   : > { %1254 = sst [smem:[#allocation13_spill]] %s845_s18  ;;  %s30_s22 = sadd.s32 1, %s841_s17 }
  0x10   : > { %s33_s23 = sadd.s32 1, %s845_s18  ;;  %p31_p0 = scmp.ge.s32.totalorder %s30_s22, 2 }
  0x11   : > { %s485_s24 = sshll.u32 %s845_s18, 1  ;;  %s44_s26 = sadd.s32 1, %s829_s14 }
  0x12   : > { %s935_s25 = sadd.s32 %s841_s17, %s485_s24  ;;  %s1283_s22 = smov (%p31_p0, %s30_s22), 0 }
  0x13   : > { %1255 = sst [smem:[#allocation14_spill]] %s1283_s22  ;;  %s1285_s23 = smov (!%p31_p0, %s33_s23), %s845_s18 }
  0x14   : > { %p51_p1 = scmp.ne.s32.totalorder %s829_s14, %s825_s13  ;;  %p52_p2 = scmp.eq.s32.totalorder %s849_s19, 0 }
  0x15   : > { %p35_p3 = scmp.ge.s32.totalorder %s1285_s23, 2  ;;  %p57_p4 = scmp.ne.s32.totalorder %s825_s13, %s821_s12 }
  0x16   : > { %p945_p5 = por %p52_p2, %p51_p1  ;;  %p58_p6 = scmp.eq.s32.totalorder %s483_s20, 0 }
  0x17   : > { %s1287_s23 = smov (%p35_p3, %s1285_s23), 0  ;;  %s100_s29 = sadd.s32 1, %s817_s11 }
  0x18   : > { %1257 = sst [smem:[#allocation15_spill]] %s1287_s23  ;;  %p951_p7 = por %p58_p6, %p57_p4 }
  0x19   : > { %s486_s30 = sshll.u32 %s1287_s23, 1  ;;  %s97_s3 = ssub.s32 %s845_s18, %s1287_s23 }
  0x1a   : > { %s1258_s28 = scalar_select %p951_p7, 1, 0 }
  0x1b   : > { %s40_s4 = sadd.s32 %s486_s30, %s1283_s22  ;;  %p98_p8 = scmp.eq.s32.totalorder %s97_s3, 0 }
  0x1c   : > { %s41_s5 = ssub.s32 %s935_s25, %s40_s4  ;;  %p110_p9 = scmp.ne.s32.totalorder %s817_s11, %s813_s10 }
  0x1d   : > { %p42_p10 = scmp.eq.s32.totalorder %s41_s5, 0  ;;  %p111_p11 = scmp.eq.s32.totalorder %s483_s20, 3 }
  0x1e   : > { %s964_s6 = scalar_select %p98_p8, %s817_s11, %s100_s29  }
  0x1f   : > { %s967_s7 = scalar_select %p42_p10, %s829_s14, %s44_s26  }
  0x20   : > { %p969_p12 = por %p111_p11, %p110_p9  ;;  %p116_p13 = scmp.ne.s32.totalorder %s813_s10, %s809_s9 }
  0x21   : > { %1259 = sst [smem:[#allocation16_spill]] %s967_s7  ;;  %p117_p0 = scmp.eq.s32.totalorder %s484_s21, 3 }
  0x22   : > { %s1260_s8 = scalar_select %p969_p12, 1, 0 }
  0x23   : > { %p545_p1 = scmp.lt.s32.totalorder %s849_s19, 4  ;;  %s979_s12 = sand.u32 1, %s829_s14  }
  0x24   : > { %p981_p2 = por %p117_p0, %p116_p13  ;;  %s491_s20 = sshll.u32 %s979_s12, 5 }
  0x25   : > { %s1244_s29 = sshll.u32 %s935_s25, 7  ;;  %s1262_s0 = sld [smem:[#allocation17_spill]] }
  0x26   : > { %s1261_s24 = scalar_select %p981_p2, 1, 0 }
  0x27   : > { %s141_s21 = scalar_lea.vmem [#allocation2], %s491_s20  ;;  %p996_p3 = pnand %p545_p1, %p945_p5 }
  0x28   : > { %s149_s4 = sshll.u32 %s141_s21, 4  ;;  %s1000_s4 = int_to_ptr.vmem [resolvable:$true] %s149_s4 }
  0x29   : > { %p664_p8 = pneg %p996_p3 }
  0x2b   : > { %s992_s3 = scalar_lea.hbm %s1262_s0, %s1244_s29  ;;  %s667_s30 = scalar_lea.hbm %s1262_s0, 2048 }
  0x2c   : > { %s662_s26 = scalar_lea.hbm %s992_s3, 512  ;;  %p668_p5 = scmp.lt.u32.totalorder %s992_s3, %s1262_s0 }
  0x2d   : > { %p663_p6 = scmp.ne.s32.totalorder %s992_s3, %s662_s26  ;;  %p669_p11 = scmp.lt.u32.totalorder %s667_s30, %s662_s26 }
  0x2e   : > { %p671_p0 = scmp.lt.u32.totalorder %s662_s26, %s992_s3 }
  0x2f   : > { %p665_p9 = pnand %p664_p8, %p663_p6  ;;  %p670_p13 = por %p669_p11, %p668_p5 }
  0x31   : > { %p666_p10 = pneg %p665_p9  ;;  %p672_p1 = por %p671_p0, %p670_p13 }
  0x33   : > { %p673_p4 = pnand %p672_p1, %p666_p10 }
  0x35   : > { %676 = shalt.err (!%p673_p4)
}
  0x36   : > { %s677_s23 = scalar_lea.vmem %s1000_s4, 512  ;;  %s851_s20 = smov [#allocation2]  }
  0x37   : > { %p678_p6 = scmp.ne.s32.totalorder %s1000_s4, %s677_s23  ;;  %s682_s27 = sshll.u32 %s851_s20, 4  ;;  %s683_s27 = int_to_ptr.vmem [resolvable:$false] %s682_s27 }
  0x38   : > { %s684_s29 = scalar_lea.vmem %s683_s27, 1024  ;;  %p685_p12 = scmp.lt.s32.totalorder %s1000_s4, %s683_s27 }
  0x39   : > { %p680_p9 = pnand %p678_p6, %p664_p8  ;;  %p686_p5 = scmp.lt.s32.totalorder %s684_s29, %s677_s23 }
  0x3b   : > { %p681_p2 = pneg %p680_p9  ;;  %p687_p11 = por %p686_p5, %p685_p12 }
  0x3d   : > { %p688_p13 = pnand %p687_p11, %p681_p2 }
  0x3f   : > { %691 = shalt.err (!%p688_p13)
}
  0x40   : > { %s852_s26 = smov 512   ;;  %s853_s30 = smov 128  }
  0x41   : > { %s854_s21 = smov 8   ;;  %s1264_s23 = scalar_lea.sflag [#allocation3], %s979_s12 }
  0x42   : > { %537 = dma.hbm_to_vmem [thread:$0]  (!%p996_p3), %s992_s3, 512, %s1000_s4, %s1264_s23, %s852_s26, %s853_s30, %s854_s21  }
  0x43   : > { %p180_p12 = scmp.lt.s32.totalorder %s849_s19, 5  ;;  %s494_s20 = sshll.u32 %s979_s12, 4 }
  0x44   : > { %s1265_s27 = sshll.u32 %s935_s25, 7  ;;  %p1266_p2 = scmp.ge.s32.totalorder %s849_s19, 1 }
  0x45   : > { %s414_s22 = scalar_lea.hbm %s1241_s1, %s1265_s27  ;;  %s163_s7 = scalar_lea.vmem [#allocation5], %s494_s20 }
  0x46   : > { %p1042_p4 = pnand %p1266_p2, %p180_p12  ;;  %s1046_s17 = scalar_lea.hbm %s414_s22, 512 }
  0x47   : > { %s172_s14 = sshll.u32 %s163_s7, 4  ;;  %s160_s3 = scalar_lea.sflag [#allocation6], %s979_s12  ;;  %s1048_s14 = int_to_ptr.vmem [resolvable:$true] %s172_s14 }
  0x48   : > { %s722_s25 = scalar_lea.hbm %s414_s22, 768  ;;  %s697_s26 = scalar_lea.hbm %s1241_s1, 2048 }
  0x49   : > { %p693_p10 = scmp.ne.s32.totalorder %s1046_s17, %s722_s25  ;;  %p698_p6 = scmp.lt.u32.totalorder %s1046_s17, %s1241_s1 }
  0x4a   : > { %p699_p9 = scmp.lt.u32.totalorder %s697_s26, %s722_s25  ;;  %p701_p11 = scmp.lt.u32.totalorder %s722_s25, %s1046_s17 }
  0x4b   : > { %p695_p0 = pnand %p693_p10, %p664_p8 }
  0x4c   : > { %p700_p5 = por %p699_p9, %p698_p6 }
  0x4d   : > { %p696_p1 = pneg %p695_p0 }
  0x4e   : > { %p702_p13 = por %p701_p11, %p700_p5 }
  0x50   : > { %p703_p12 = pnand %p702_p13, %p696_p1 }
  0x52   : > { %706 = shalt.err (!%p703_p12)
}
  0x53   : > { %s707_s22 = scalar_lea.vmem %s1048_s14, 256  ;;  %s855_s7 = smov [#allocation5]  }
  0x54   : > { %p708_p2 = scmp.ne.s32.totalorder %s1048_s14, %s707_s22  ;;  %s712_s20 = sshll.u32 %s855_s7, 4  ;;  %s713_s20 = int_to_ptr.vmem [resolvable:$false] %s712_s20 }
  0x55   : > { %s714_s29 = scalar_lea.vmem %s713_s20, 512  ;;  %p715_p7 = scmp.lt.s32.totalorder %s1048_s14, %s713_s20 }
  0x56   : > { %p710_p10 = pnand %p708_p2, %p664_p8  ;;  %p716_p6 = scmp.lt.s32.totalorder %s714_s29, %s707_s22 }
  0x58   : > { %p711_p0 = pneg %p710_p10  ;;  %p717_p9 = por %p716_p6, %p715_p7 }
  0x5a   : > { %p718_p5 = pnand %p717_p9, %p711_p0 }
  0x5c   : > { %721 = shalt.err (!%p718_p5)
}
  0x5d   : > { %s856_s25 = smov 1024   ;;  %184 = sbr.rel (%p1042_p4) target bundleno = 197 (0xc5), region = 28 }
  0x5e   : > { %540 = dma.hbm_to_vmem [thread:$0]  (!%p996_p3), %s1046_s17, 256, %s1048_s14, %s160_s3, %s856_s25, %s853_s30, %s854_s21  }
  0x5f   : > { %s186_s0 = sand.u32 (!%p1042_p4), 1, %s825_s13   ;;  %p1268_p7 = scmp.ne.s32.totalorder (!%p1042_p4), %s1258_s28, 0 }
  0x60   : > { %s498_s4 = sshll.u32 (!%p1042_p4), %s186_s0, 5  ;;  %s187_s26 = scalar_lea.sflag (!%p1042_p4), [#allocation3], %s186_s0 }
  0x61   : > { %s1080_s23 = scalar_lea.vmem (!%p1042_p4), [#allocation2], %s498_s4 }
  0x64   : > { %796 = dma.done.wait (%p1268_p7), %s187_s26, 512  }
  0x65   : > { %798 = vsyncadd (%p1268_p7), %s187_s26, 4294966784  ;;  %s499_s12 = sshll.u32 %s186_s0, 4  ;;  %s196_s5 = scalar_lea.sflag [#allocation6], %s186_s0 }
  0x66   : > { %s1086_s27 = scalar_lea.vmem [#allocation5], %s499_s12 }
  0x67   : > { %800 = dma.done.wait (%p1268_p7), %s196_s5, 256  }
  0x68   : > { %802 = vsyncadd (%p1268_p7), %s196_s5, 4294967040  ;;  %s222_s14 = sand.u32 1, %s813_s10   ;;  %p500_p3 = scmp.ne.s32.totalorder %s833_s15, 0 }
  0x69   : > { %s526_s17 = smul.u32 96, %s222_s14  ;;  %v857_v0 = vmov (!%p500_p3), 0.0  }
  0x6a   : > { %232 = sbr.rel (%p500_p3) target bundleno = 114 (0x72), region = 40 }
  0x6b   : > { %s1095_s18 = scalar_lea.vmem [#allocation7], %s526_s17 }
  0x6c   : > { %233 = vst [vmem:[%s1095_s18] sm:$0xff] (!%p500_p3), %v857_v0  ;;  %234 = vst [vmem:[%s1095_s18 + $0x8] sm:$0xff] (!%p500_p3), %v857_v0 }
  0x6d   : > { %235 = vst [vmem:[%s1095_s18 + $0x10] sm:$0xff] (!%p500_p3), %v857_v0  ;;  %236 = vst [vmem:[%s1095_s18 + $0x18] sm:$0xff] (!%p500_p3), %v857_v0 }
  0x6e   : > { %237 = vst [vmem:[%s1095_s18 + $0x20] sm:$0xff] (!%p500_p3), %v857_v0  ;;  %238 = vst [vmem:[%s1095_s18 + $0x28] sm:$0xff] (!%p500_p3), %v857_v0 }
  0x6f   : > { %239 = vst [vmem:[%s1095_s18 + $0x30] sm:$0xff] (!%p500_p3), %v857_v0  ;;  %240 = vst [vmem:[%s1095_s18 + $0x38] sm:$0xff] (!%p500_p3), %v857_v0 }
  0x70   : > { %241 = vst [vmem:[%s1095_s18 + $0x40] sm:$0xff] (!%p500_p3), %v857_v0  ;;  %242 = vst [vmem:[%s1095_s18 + $0x48] sm:$0xff] (!%p500_p3), %v857_v0 }
  0x71   : > { %243 = vst [vmem:[%s1095_s18 + $0x50] sm:$0xff] %v857_v0  ;;  %244 = vst [vmem:[%s1095_s18 + $0x58] sm:$0xff] %v857_v0 }
  0x72 PF: > { %v245_v1 = vld [vmem:[%s1080_s23] sm:$0xff]  ;;  %v501_v2 = vld [vmem:[%s1080_s23 + $0x8] sm:$0xff]  ;;  %v246_v4 = vld [vmem:[%s1080_s23 + $0x10] sm:$0xff]  ;;  %s527_s15 = smul.u32 1536, %s837_s16  ;;  %s371_s28 = sshll.u32 %s1095_s18, 4  ;;  %s1173_s28 = int_to_ptr.vmem [resolvable:$true] %s371_s28 }
  0x73   : > { %v254_v3 = vmax.f32 %v245_v1, %v501_v2  ;;  %v502_v5 = vld [vmem:[%s1080_s23 + $0x18] sm:$0xff]  ;;  %v1119_v9 = vld [vmem:[%s1086_s27] sm:$0xff]  ;;  %s1179_s16 = scalar_lea.sflag [#allocation4], %s222_s14  ;;  %s723_s22 = scalar_lea.vmem %s1173_s28, 1536 }
  0x74   : > { %v255_v6 = vmax.f32 %v246_v4, %v502_v5  ;;  %v1129_v15 = vld [vmem:[%s1086_s27 + $0x8] sm:$0xff]  ;;  %v252_v29 = vsub.f32 1.0, %v1119_v9  ;;  %v312_v36 = vld [vmem:[%s1095_s18] sm:$0xff]  ;;  %s1171_s3 = scalar_lea.hbm %s1242_s2, %s527_s15  ;;  %p724_p8 = scmp.ne.s32.totalorder %s1173_s28, %s723_s22 }
  0x75   : > { %v1114_v7 = vsub.f32 %v245_v1, %v254_v3  ;;  %v1116_v8 = vsub.f32 %v501_v2, %v254_v3  ;;  %v253_v37 = vsub.f32 1.0, %v1129_v15  ;;  %v503_v38 = vld [vmem:[%s1095_s18 + $0x10] sm:$0xff]  ;;  %v313_v47 = vld [vmem:[%s1095_s18 + $0x8] sm:$0xff]  ;;  %v504_v48 = vld [vmem:[%s1095_s18 + $0x18] sm:$0xff]  ;;  %p1269_p4 = scmp.ne.s32.totalorder %s1260_s8, 0  ;;  %s858_s7 = smov [#allocation7]  }
  0x76   : > { %v1121_v10 = vsub.f32 %v246_v4, %v255_v6  ;;  %v1123_v11 = vsub.f32 %v502_v5, %v255_v6  ;;  %v507_v32 = vld [vmem:[%s1095_s18 + $0x20] sm:$0xff]  ;;  %v508_v44 = vld [vmem:[%s1095_s18 + $0x28] sm:$0xff]  ;;  %s727_s20 = sshll.u32 %s858_s7, 4  ;;  %s728_s20 = int_to_ptr.vmem [resolvable:$false] %s727_s20 }
  0x77   : > { %v260_v13 = vmul.f32 1.442695, %v1114_v7  ;;  %v264_v14 = vmul.f32 1.442695, %v1116_v8  ;;  %v511_v33 = vld [vmem:[%s1095_s18 + $0x30] sm:$0xff]  ;;  %v512_v45 = vld [vmem:[%s1095_s18 + $0x38] sm:$0xff]  ;;  %p725_p1 = pnand %p724_p8, %p1269_p4  ;;  %p730_p13 = scmp.lt.s32.totalorder %s1173_s28, %s728_s20 }
  0x78   : > { %v515_v12 = vld [vmem:[%s1095_s18 + $0x40] sm:$0xff]  ;;  %v516_v17 = vld [vmem:[%s1095_s18 + $0x48] sm:$0xff]  ;;  %v262_v18 = vmul.f32 1.442695, %v1121_v10  ;;  %v266_v19 = vmul.f32 1.442695, %v1123_v11 }
  0x79   : > { %v346_v16 = vadd.f32 %v515_v12, %v1119_v9  ;;  %v347_v20 = vadd.f32 %v516_v17, %v1129_v15  ;;  %642 = vpow2.f32 %v260_v13  ;;  %p726_p11 = pneg %p725_p1  ;;  %s729_s29 = scalar_lea.vmem %s728_s20, 3072 }
  0x7a   : > { %644 = vpow2.f32 %v264_v14  ;;  %p731_p12 = scmp.lt.s32.totalorder %s729_s29, %s723_s22 }
  0x7b   : > { %517 = vst [vmem:[%s1095_s18 + $0x40] sm:$0xff] %v346_v16  ;;  %518 = vst [vmem:[%s1095_s18 + $0x48] sm:$0xff] %v347_v20  ;;  %646 = vpow2.f32 %v262_v18 }
  0x7c   : > { %648 = vpow2.f32 %v266_v19  ;;  %p732_p2 = por %p731_p12, %p730_p13 }
  0x7e   : > { %p733_p10 = pnand %p732_p2, %p726_p11 }
  0x83   : > { %v643_v21 = vpop.eup %642 }
  0x84   : > { %v645_v22 = vpop.eup %644 }
  0x85   : > { %v647_v23 = vpop.eup %646  ;;  %v268_v24 = vadd.f32 %v645_v22, %v643_v21 }
  0x86   : > { %v649_v25 = vpop.eup %648 }
  0x87   : > { %650 = vrcp.f32 %v268_v24  ;;  %v269_v26 = vadd.f32 %v649_v25, %v647_v23 }
  0x88   : > { %652 = vlog2.f32 %v268_v24 }
  0x89   : > { %654 = vrcp.f32 %v269_v26 }
  0x8a   : > { %656 = vlog2.f32 %v269_v26 }
  0x91   : > { %v651_v27 = vpop.eup %650 }
  0x92   : > { %v653_v28 = vpop.eup %652  ;;  %v272_v30 = vmul.f32 %v651_v27, %v643_v21  ;;  %v274_v31 = vmul.f32 %v651_v27, %v645_v22  ;;  %v520_v27 = vld [vmem:[%s1095_s18 + $0x58] sm:$0xff] }
  0x93   : > { %v655_v34 = vpop.eup %654  ;;  %v277_v35 = vmul.f32 0.6931472, %v653_v28 }
  0x94   : > { %v657_v39 = vpop.eup %656  ;;  %v314_v40 = vmul.f32 %v272_v30, %v252_v29  ;;  %v273_v41 = vmul.f32 %v655_v34, %v647_v23  ;;  %v323_v42 = vmul.f32 %v274_v31, %v1119_v9  ;;  %v275_v43 = vmul.f32 %v655_v34, %v649_v25 }
  0x95   : > { %v279_v46 = vmul.f32 0.6931472, %v657_v39  ;;  %v332_v49 = vadd.f32 %v507_v32, %v272_v30  ;;  %v339_v50 = vadd.f32 %v511_v33, %v274_v31  ;;  %v286_v59 = vsub.f32 %v1116_v8, %v277_v35 }
  0x96   : > { %v316_v51 = vadd.f32 %v314_v40, %v312_v36  ;;  %v315_v52 = vmul.f32 %v273_v41, %v253_v37  ;;  %v325_v53 = vadd.f32 %v503_v38, %v323_v42  ;;  %v324_v54 = vmul.f32 %v275_v43, %v1129_v15 }
  0x97   : > { %509 = vst [vmem:[%s1095_s18 + $0x20] sm:$0xff] %v332_v49  ;;  %v333_v55 = vadd.f32 %v508_v44, %v273_v41  ;;  %513 = vst [vmem:[%s1095_s18 + $0x30] sm:$0xff] %v339_v50  ;;  %v340_v56 = vadd.f32 %v512_v45, %v275_v43  ;;  %v287_v60 = vsub.f32 %v1123_v11, %v279_v46  ;;  %v288_v61 = vmax.f32 %v286_v59, -16.118095 }
  0x98   : > { %318 = vst [vmem:[%s1095_s18] sm:$0xff] %v316_v51  ;;  %v317_v57 = vadd.f32 %v315_v52, %v313_v47  ;;  %505 = vst [vmem:[%s1095_s18 + $0x10] sm:$0xff] %v325_v53  ;;  %v326_v58 = vadd.f32 %v504_v48, %v324_v54  ;;  %v280_v3 = vsub.f32 %v1114_v7, %v277_v35 }
  0x99   : > { %510 = vst [vmem:[%s1095_s18 + $0x28] sm:$0xff] %v333_v55  ;;  %514 = vst [vmem:[%s1095_s18 + $0x38] sm:$0xff] %v340_v56  ;;  %v289_v62 = vmax.f32 %v287_v60, -16.118095  ;;  %v290_v63 = vmin.f32 %v288_v61, -1.0000001e-07  ;;  %v281_v4 = vsub.f32 %v1121_v10, %v279_v46 }
  0x9a   : > { %319 = vst [vmem:[%s1095_s18 + $0x8] sm:$0xff] %v317_v57  ;;  %506 = vst [vmem:[%s1095_s18 + $0x18] sm:$0xff] %v326_v58  ;;  %v282_v8 = vmax.f32 %v280_v3, -16.118095 }
  0x9b   : > { %v291_v0 = vmin.f32 %v289_v62, -1.0000001e-07  ;;  %v292_v1 = vmul.f32 0.8, %v290_v63  ;;  %v283_v11 = vmax.f32 %v281_v4, -16.118095  ;;  %v304_v14 = vmul.f32 %v290_v63, %v1119_v9 }
  0x9c   : > { %v284_v12 = vmin.f32 %v282_v8, -1.0000001e-07  ;;  %v519_v9 = vld [vmem:[%s1095_s18 + $0x50] sm:$0xff] }
  0x9d   : > { %v293_v2 = vmul.f32 0.8, %v291_v0  ;;  %v294_v5 = vmul.f32 1.442695, %v292_v1  ;;  %v285_v13 = vmin.f32 %v283_v11, -1.0000001e-07  ;;  %v305_v16 = vmul.f32 %v291_v0, %v1129_v15 }
  0x9e   : > { %v300_v17 = vmul.f32 %v284_v12, %v252_v29  ;;  %v306_v20 = vmul.f32 0.6, %v304_v14 }
  0x9f   : > { %v296_v6 = vmul.f32 1.442695, %v293_v2  ;;  %658 = vpow2.f32 %v294_v5  ;;  %v301_v18 = vmul.f32 %v285_v13, %v253_v37  ;;  %v307_v22 = vmul.f32 0.6, %v305_v16 }
  0xa1   : > { %660 = vpow2.f32 %v296_v6 }
  0xa9   : > { %v659_v7 = vpop.eup %658 }
  0xaa   : > { %v298_v19 = vmul.f32 0.4, %v659_v7 }
  0xab   : > { %v661_v10 = vpop.eup %660 }
  0xac   : > { %v299_v21 = vmul.f32 0.4, %v661_v10  ;;  %v302_v23 = vmul.f32 %v300_v17, %v298_v19 }
  0xae   : > { %v303_v24 = vmul.f32 %v301_v18, %v299_v21  ;;  %v308_v25 = vadd.f32 %v306_v20, %v302_v23 }
  0xb0   : > { %v309_v15 = vadd.f32 %v307_v22, %v303_v24  ;;  %v310_v26 = vsub.f32 0.0, %v308_v25 }
  0xb2   : > { %v311_v28 = vsub.f32 0.0, %v309_v15  ;;  %v353_v29 = vadd.f32 %v519_v9, %v310_v26 }
  0xb4   : > { %v354_v30 = vadd.f32 %v520_v27, %v311_v28  ;;  %521 = vst [vmem:[%s1095_s18 + $0x50] sm:$0xff] %v353_v29 }
  0xb6   : > { %522 = vst [vmem:[%s1095_s18 + $0x58] sm:$0xff] %v354_v30 }
  0xb7   : > { %736 = shalt.err (!%p733_p10)
}
  0xb8   : > { %s737_s25 = scalar_lea.hbm %s1171_s3, 1536  ;;  %s741_s26 = scalar_lea.hbm %s1242_s2, 3072 }
  0xb9   : > { %p738_p0 = scmp.ne.s32.totalorder %s1171_s3, %s737_s25  ;;  %p742_p5 = scmp.lt.u32.totalorder %s1171_s3, %s1242_s2 }
  0xba   : > { %p743_p7 = scmp.lt.u32.totalorder %s741_s26, %s737_s25  ;;  %p745_p8 = scmp.lt.u32.totalorder %s737_s25, %s1171_s3 }
  0xbb   : > { %p739_p6 = pnand %p738_p0, %p1269_p4 }
  0xbc   : > { %p744_p3 = por %p743_p7, %p742_p5 }
  0xbd   : > { %p740_p9 = pneg %p739_p6 }
  0xbe   : > { %p746_p1 = por %p745_p8, %p744_p3 }
  0xc0   : > { %p747_p11 = pnand %p746_p1, %p740_p9 }
  0xc2   : > { %750 = shalt.err (!%p747_p11)
}
  0xc3   : > { %s859_s5 = smov 128   ;;  %s860_s27 = smov 8  }
  0xc4   : > { %532 = dma.vmem_to_hbm [thread:$0]  (%p1269_p4), %s1173_s28, 1536, %s1171_s3, %s1179_s16, %s859_s5, %s859_s5, %s860_s27  }
  0xc5 PF: > { %p546_p13 = scmp.ge.s32.totalorder %s849_s19, 2  ;;  %s386_s14 = sand.u32 1, %s809_s9  }
  0xc6   : > { %p1270_p12 = scmp.ne.s32.totalorder %s1261_s24, 0  ;;  %s387_s17 = scalar_lea.sflag [#allocation4], %s386_s14 }
  0xc8   : > { %p542_p2 = pnand %p546_p13, %p1270_p12 }
  0xca   : > { %804 = dma.done.wait (!%p542_p2), %s387_s17, 1536  }
  0xcb   : > { %806 = vsyncadd (!%p542_p2), %s387_s17, 4294965760  ;;  %s21_s19 = sadd.s32 1, %s849_s19   ;;  %s1271_s8 = sld [smem:[#allocation11_spill]] }
  0xcc   : > { %p18_p10 = scmp.ge.s32.totalorder %s21_s19, 6   ;;  %s1272_s14 = sld [smem:[#allocation16_spill]] }
  0xcd   : > { %s1273_s15 = sld [smem:[#allocation12_spill]]  ;;  %s1274_s16 = sld [smem:[#allocation13_spill]] }
  0xce   : > { %s1275_s17 = sld [smem:[#allocation14_spill]]  ;;  %s1276_s18 = sld [smem:[#allocation15_spill]] }
  0xcf   : > { %s1277_s9 = smov %s813_s10  ;;  %s1278_s10 = smov %s817_s11 }
  0xd0   : > { %s1279_s11 = smov %s964_s6  ;;  %s1280_s12 = smov %s825_s13 }
  0xd1   : > { %s1281_s13 = smov %s1271_s8  ;;  %20 = sbr.rel (!%p18_p10) target bundleno = 13 (0xd), region = 96 }
  0xd8   :  { %392 = vsyncpa [#allocation3], 1 }
  0xd9   :  { %394 = vsyncpa [#allocation3 + $0x1], 1 }
  0xda   :  { %395 = vsyncpa [#allocation6], 1 }
  0xdb   :  { %397 = vsyncpa [#allocation6 + $0x1], 1 }
  0xdc   :  { %398 = vsyncpa [#allocation4], 1 }
  0xdd   :  { %400 = vsyncpa [#allocation4 + $0x1], 1 }

</bundles_post_ra>
